<compile_context>
chip_gen: v5e
topology: v5e:2x2
jax: 0.10.0
libtpu: 0.0.40
codegen_flags: <defaults>
</compile_context>

<pallas_src>
import jax
import jax.numpy as jnp
from jax.experimental import pallas as pl
from jax.experimental.pallas import tpu as pltpu


def conv1x1_add3_relu6_kernel(x_ref, w_ref, b3_ref, o_ref):
    """x_ref: (Cin, M) VMEM, w_ref: (Cout, Cin) SMEM, b3_ref: (Cout,) SMEM,
    o_ref: (Cout, M) VMEM.  out[co] = clip(sum_ci w[co,ci]*x[ci] + b3[co], 0, 6)."""
    cin = x_ref.shape[0]
    cout = o_ref.shape[0]
    x = x_ref[...]                                    # (Cin, M), lane-dense
    for co in range(cout):                            # fully unrolled: Cout*Cin VPU FMAs
        acc = x[0:1, :] * w_ref[co, 0]
        for ci in range(1, cin):
            acc = acc + x[ci:ci + 1, :] * w_ref[co, ci]
        o_ref[co:co + 1, :] = jnp.clip(acc + b3_ref[co], 0.0, 6.0)


def conv1x1_pad1_add3_relu6(x_nchw, weight, bias):
    """relu6(3 + conv2d(x, weight, bias, k=1, stride=1, padding=1)), NCHW in/out."""
    n, cin, h, w = x_nchw.shape
    cout = weight.shape[0]
    m = n * h * w

    # Channel-major flatten. For N=1 NCHW is already channel-major -> free reshape.
    if n == 1:
        x_cm = x_nchw.reshape(cin, m)
    else:
        x_cm = jnp.moveaxis(x_nchw, 1, 0).reshape(cin, m)
    x_cm = x_cm.astype(jnp.float32)

    w2d = weight[:, :, 0, 0].astype(jnp.float32)       # (Cout, Cin) scalars -> SMEM
    b3 = bias.astype(jnp.float32) + 3.0                # fold the "3 +" into the bias

    interior = pl.pallas_call(
        conv1x1_add3_relu6_kernel,
        out_shape=jax.ShapeDtypeStruct((cout, m), jnp.float32),
        in_specs=[
            pl.BlockSpec(memory_space=pltpu.MemorySpace.VMEM),   # x (Cin, M)
            pl.BlockSpec(memory_space=pltpu.MemorySpace.SMEM),   # weights (Cout, Cin)
            pl.BlockSpec(memory_space=pltpu.MemorySpace.SMEM),   # bias + 3 (Cout,)
        ],
        out_specs=pl.BlockSpec(memory_space=pltpu.MemorySpace.VMEM),
    )(x_cm, w2d, b3)

    # padding=1 on a 1x1 conv: border pixels see only zero input, so after
    # "+3" and ReLU6 they are the per-channel constant clip(bias + 3, 0, 6).
    border = jnp.clip(b3, 0.0, 6.0)                    # (Cout,)
    if n == 1:
        interior_nchw = interior.reshape(1, cout, h, w)
    else:
        interior_nchw = interior.reshape(cout, n, h, w).transpose(1, 0, 2, 3)
    out = jnp.broadcast_to(border[None, :, None, None], (n, cout, h + 2, w + 2))
    out = jax.lax.dynamic_update_slice(out, interior_nchw, (0, 0, 1, 1))
    return out


def model_forward(x1, weight, bias):
    # t1 = 3 + conv(x1); t2 = relu6(t1)  -- fused in the Pallas kernel above.
    t2 = conv1x1_pad1_add3_relu6(x1, weight, bias)
    # TODO(synk): the PyTorch forward then calls self.conv(t2), but t2 has 6
    # channels while self.conv expects 3, so PyTorch raises a RuntimeError;
    # the second conv is therefore not computable and t2 is returned.
    return t2


if __name__ == "__main__":
    key = jax.random.PRNGKey(0)
    kx, kw, kb = jax.random.split(key, 3)

    # Small shapes consistent with the module's (1, 3, H, W) input.
    n, cin, h, w, cout = 1, 3, 16, 16, 6
    x1 = jax.random.normal(kx, (n, cin, h, w), dtype=jnp.float32)

    # Deterministic Conv2d-style init: U(-k, k), k = 1/sqrt(fan_in), fan_in = cin*1*1.
    k = 1.0 / (cin ** 0.5)
    weight = jax.random.uniform(kw, (cout, cin, 1, 1), minval=-k, maxval=k,
                                dtype=jnp.float32)
    bias = jax.random.uniform(kb, (cout,), minval=-k, maxval=k, dtype=jnp.float32)

    out = model_forward(x1, weight, bias)
    out = jax.block_until_ready(out)

    # Plain-JAX reference: relu6(3 + conv2d(pad=1, k=1))
    x_pad = jnp.pad(x1, ((0, 0), (0, 0), (1, 1), (1, 1)))
    conv_ref = jnp.einsum('oi,nihw->nohw', weight[:, :, 0, 0], x_pad) \
        + bias[None, :, None, None]
    ref = jnp.clip(conv_ref + 3.0, 0.0, 6.0)

    assert out.shape == (n, cout, h + 2, w + 2)
    assert bool(jnp.all((out >= 0.0) & (out <= 6.0)))
    assert bool(jnp.allclose(out, ref, atol=1e-5, rtol=1e-5))
    print("KERNEL_OK")
</pallas_src>

<mosaic_0001>
module attributes {stable_mosaic.version = 11 : i64} {
  func.func @conv1x1_add3_relu6_kernel(%arg0: memref<3x256xf32, #tpu.memory_space<vmem>>, %arg1: memref<6x3xf32, #tpu.memory_space<smem>>, %arg2: memref<6xf32, #tpu.memory_space<smem>>, %arg3: memref<6x256xf32, #tpu.memory_space<vmem>>) attributes {dimension_semantics = [], scalar_prefetch = 0 : i64, scratch_operands = 0 : i64, tpu.core_type = #tpu.core_type<tc>} {
    %c0 = arith.constant 0 : index
    %c0_0 = arith.constant 0 : index
    %0 = vector.load %arg0[%c0, %c0_0] : memref<3x256xf32, #tpu.memory_space<vmem>>, vector<3x256xf32>
    %1 = vector.extract_strided_slice %0 {offsets = [0, 0], sizes = [1, 256], strides = [1, 1]} : vector<3x256xf32> to vector<1x256xf32>
    %c0_1 = arith.constant 0 : index
    %c0_2 = arith.constant 0 : index
    %2 = memref.load %arg1[%c0_1, %c0_2] : memref<6x3xf32, #tpu.memory_space<smem>>
    %3 = vector.broadcast %2 : f32 to vector<1x256xf32>
    %4 = arith.mulf %1, %3 : vector<1x256xf32>
    %5 = vector.extract_strided_slice %0 {offsets = [1, 0], sizes = [1, 256], strides = [1, 1]} : vector<3x256xf32> to vector<1x256xf32>
    %c0_3 = arith.constant 0 : index
    %c1 = arith.constant 1 : index
    %6 = memref.load %arg1[%c0_3, %c1] : memref<6x3xf32, #tpu.memory_space<smem>>
    %7 = vector.broadcast %6 : f32 to vector<1x256xf32>
    %8 = arith.mulf %5, %7 : vector<1x256xf32>
    %9 = arith.addf %4, %8 : vector<1x256xf32>
    %10 = vector.extract_strided_slice %0 {offsets = [2, 0], sizes = [1, 256], strides = [1, 1]} : vector<3x256xf32> to vector<1x256xf32>
    %c0_4 = arith.constant 0 : index
    %c2 = arith.constant 2 : index
    %11 = memref.load %arg1[%c0_4, %c2] : memref<6x3xf32, #tpu.memory_space<smem>>
    %12 = vector.broadcast %11 : f32 to vector<1x256xf32>
    %13 = arith.mulf %10, %12 : vector<1x256xf32>
    %14 = arith.addf %9, %13 : vector<1x256xf32>
    %c0_5 = arith.constant 0 : index
    %15 = memref.load %arg2[%c0_5] : memref<6xf32, #tpu.memory_space<smem>>
    %16 = vector.broadcast %15 : f32 to vector<1x256xf32>
    %17 = arith.addf %14, %16 : vector<1x256xf32>
    %cst = arith.constant 0.000000e+00 : f32
    %cst_6 = arith.constant 6.000000e+00 : f32
    %18 = vector.broadcast %cst : f32 to vector<1x256xf32>
    %19 = arith.maximumf %18, %17 : vector<1x256xf32>
    %20 = vector.broadcast %cst_6 : f32 to vector<1x256xf32>
    %21 = arith.minimumf %20, %19 : vector<1x256xf32>
    %c0_7 = arith.constant 0 : index
    %c0_8 = arith.constant 0 : index
    %22 = vector.load %arg3[%c0_7, %c0_8] : memref<6x256xf32, #tpu.memory_space<vmem>>, vector<1x256xf32>
    tpu.vector_store %arg3[%c0_7, %c0_8], %21 {strides = array<i32>} : memref<6x256xf32, #tpu.memory_space<vmem>>, vector<1x256xf32>,
    %23 = vector.extract_strided_slice %0 {offsets = [0, 0], sizes = [1, 256], strides = [1, 1]} : vector<3x256xf32> to vector<1x256xf32>
    %c1_9 = arith.constant 1 : index
    %c0_10 = arith.constant 0 : index
    %24 = memref.load %arg1[%c1_9, %c0_10] : memref<6x3xf32, #tpu.memory_space<smem>>
    %25 = vector.broadcast %24 : f32 to vector<1x256xf32>
    %26 = arith.mulf %23, %25 : vector<1x256xf32>
    %27 = vector.extract_strided_slice %0 {offsets = [1, 0], sizes = [1, 256], strides = [1, 1]} : vector<3x256xf32> to vector<1x256xf32>
    %c1_11 = arith.constant 1 : index
    %c1_12 = arith.constant 1 : index
    %28 = memref.load %arg1[%c1_11, %c1_12] : memref<6x3xf32, #tpu.memory_space<smem>>
    %29 = vector.broadcast %28 : f32 to vector<1x256xf32>
    %30 = arith.mulf %27, %29 : vector<1x256xf32>
    %31 = arith.addf %26, %30 : vector<1x256xf32>
    %32 = vector.extract_strided_slice %0 {offsets = [2, 0], sizes = [1, 256], strides = [1, 1]} : vector<3x256xf32> to vector<1x256xf32>
    %c1_13 = arith.constant 1 : index
    %c2_14 = arith.constant 2 : index
    %33 = memref.load %arg1[%c1_13, %c2_14] : memref<6x3xf32, #tpu.memory_space<smem>>
    %34 = vector.broadcast %33 : f32 to vector<1x256xf32>
    %35 = arith.mulf %32, %34 : vector<1x256xf32>
    %36 = arith.addf %31, %35 : vector<1x256xf32>
    %c1_15 = arith.constant 1 : index
    %37 = memref.load %arg2[%c1_15] : memref<6xf32, #tpu.memory_space<smem>>
    %38 = vector.broadcast %37 : f32 to vector<1x256xf32>
    %39 = arith.addf %36, %38 : vector<1x256xf32>
    %cst_16 = arith.constant 0.000000e+00 : f32
    %cst_17 = arith.constant 6.000000e+00 : f32
    %40 = vector.broadcast %cst_16 : f32 to vector<1x256xf32>
    %41 = arith.maximumf %40, %39 : vector<1x256xf32>
    %42 = vector.broadcast %cst_17 : f32 to vector<1x256xf32>
    %43 = arith.minimumf %42, %41 : vector<1x256xf32>
    %c1_18 = arith.constant 1 : index
    %c0_19 = arith.constant 0 : index
    %44 = vector.load %arg3[%c1_18, %c0_19] : memref<6x256xf32, #tpu.memory_space<vmem>>, vector<1x256xf32>
    tpu.vector_store %arg3[%c1_18, %c0_19], %43 {strides = array<i32>} : memref<6x256xf32, #tpu.memory_space<vmem>>, vector<1x256xf32>,
    %45 = vector.extract_strided_slice %0 {offsets = [0, 0], sizes = [1, 256], strides = [1, 1]} : vector<3x256xf32> to vector<1x256xf32>
    %c2_20 = arith.constant 2 : index
    %c0_21 = arith.constant 0 : index
    %46 = memref.load %arg1[%c2_20, %c0_21] : memref<6x3xf32, #tpu.memory_space<smem>>
    %47 = vector.broadcast %46 : f32 to vector<1x256xf32>
    %48 = arith.mulf %45, %47 : vector<1x256xf32>
    %49 = vector.extract_strided_slice %0 {offsets = [1, 0], sizes = [1, 256], strides = [1, 1]} : vector<3x256xf32> to vector<1x256xf32>
    %c2_22 = arith.constant 2 : index
    %c1_23 = arith.constant 1 : index
    %50 = memref.load %arg1[%c2_22, %c1_23] : memref<6x3xf32, #tpu.memory_space<smem>>
    %51 = vector.broadcast %50 : f32 to vector<1x256xf32>
    %52 = arith.mulf %49, %51 : vector<1x256xf32>
    %53 = arith.addf %48, %52 : vector<1x256xf32>
    %54 = vector.extract_strided_slice %0 {offsets = [2, 0], sizes = [1, 256], strides = [1, 1]} : vector<3x256xf32> to vector<1x256xf32>
    %c2_24 = arith.constant 2 : index
    %c2_25 = arith.constant 2 : index
    %55 = memref.load %arg1[%c2_24, %c2_25] : memref<6x3xf32, #tpu.memory_space<smem>>
    %56 = vector.broadcast %55 : f32 to vector<1x256xf32>
    %57 = arith.mulf %54, %56 : vector<1x256xf32>
    %58 = arith.addf %53, %57 : vector<1x256xf32>
    %c2_26 = arith.constant 2 : index
    %59 = memref.load %arg2[%c2_26] : memref<6xf32, #tpu.memory_space<smem>>
    %60 = vector.broadcast %59 : f32 to vector<1x256xf32>
    %61 = arith.addf %58, %60 : vector<1x256xf32>
    %cst_27 = arith.constant 0.000000e+00 : f32
    %cst_28 = arith.constant 6.000000e+00 : f32
    %62 = vector.broadcast %cst_27 : f32 to vector<1x256xf32>
    %63 = arith.maximumf %62, %61 : vector<1x256xf32>
    %64 = vector.broadcast %cst_28 : f32 to vector<1x256xf32>
    %65 = arith.minimumf %64, %63 : vector<1x256xf32>
    %c2_29 = arith.constant 2 : index
    %c0_30 = arith.constant 0 : index
    %66 = vector.load %arg3[%c2_29, %c0_30] : memref<6x256xf32, #tpu.memory_space<vmem>>, vector<1x256xf32>
    tpu.vector_store %arg3[%c2_29, %c0_30], %65 {strides = array<i32>} : memref<6x256xf32, #tpu.memory_space<vmem>>, vector<1x256xf32>,
    %67 = vector.extract_strided_slice %0 {offsets = [0, 0], sizes = [1, 256], strides = [1, 1]} : vector<3x256xf32> to vector<1x256xf32>
    %c3 = arith.constant 3 : index
    %c0_31 = arith.constant 0 : index
    %68 = memref.load %arg1[%c3, %c0_31] : memref<6x3xf32, #tpu.memory_space<smem>>
    %69 = vector.broadcast %68 : f32 to vector<1x256xf32>
    %70 = arith.mulf %67, %69 : vector<1x256xf32>
    %71 = vector.extract_strided_slice %0 {offsets = [1, 0], sizes = [1, 256], strides = [1, 1]} : vector<3x256xf32> to vector<1x256xf32>
    %c3_32 = arith.constant 3 : index
    %c1_33 = arith.constant 1 : index
    %72 = memref.load %arg1[%c3_32, %c1_33] : memref<6x3xf32, #tpu.memory_space<smem>>
    %73 = vector.broadcast %72 : f32 to vector<1x256xf32>
    %74 = arith.mulf %71, %73 : vector<1x256xf32>
    %75 = arith.addf %70, %74 : vector<1x256xf32>
    %76 = vector.extract_strided_slice %0 {offsets = [2, 0], sizes = [1, 256], strides = [1, 1]} : vector<3x256xf32> to vector<1x256xf32>
    %c3_34 = arith.constant 3 : index
    %c2_35 = arith.constant 2 : index
    %77 = memref.load %arg1[%c3_34, %c2_35] : memref<6x3xf32, #tpu.memory_space<smem>>
    %78 = vector.broadcast %77 : f32 to vector<1x256xf32>
    %79 = arith.mulf %76, %78 : vector<1x256xf32>
    %80 = arith.addf %75, %79 : vector<1x256xf32>
    %c3_36 = arith.constant 3 : index
    %81 = memref.load %arg2[%c3_36] : memref<6xf32, #tpu.memory_space<smem>>
    %82 = vector.broadcast %81 : f32 to vector<1x256xf32>
    %83 = arith.addf %80, %82 : vector<1x256xf32>
    %cst_37 = arith.constant 0.000000e+00 : f32
    %cst_38 = arith.constant 6.000000e+00 : f32
    %84 = vector.broadcast %cst_37 : f32 to vector<1x256xf32>
    %85 = arith.maximumf %84, %83 : vector<1x256xf32>
    %86 = vector.broadcast %cst_38 : f32 to vector<1x256xf32>
    %87 = arith.minimumf %86, %85 : vector<1x256xf32>
    %c3_39 = arith.constant 3 : index
    %c0_40 = arith.constant 0 : index
    %88 = vector.load %arg3[%c3_39, %c0_40] : memref<6x256xf32, #tpu.memory_space<vmem>>, vector<1x256xf32>
    tpu.vector_store %arg3[%c3_39, %c0_40], %87 {strides = array<i32>} : memref<6x256xf32, #tpu.memory_space<vmem>>, vector<1x256xf32>,
    %89 = vector.extract_strided_slice %0 {offsets = [0, 0], sizes = [1, 256], strides = [1, 1]} : vector<3x256xf32> to vector<1x256xf32>
    %c4 = arith.constant 4 : index
    %c0_41 = arith.constant 0 : index
    %90 = memref.load %arg1[%c4, %c0_41] : memref<6x3xf32, #tpu.memory_space<smem>>
    %91 = vector.broadcast %90 : f32 to vector<1x256xf32>
    %92 = arith.mulf %89, %91 : vector<1x256xf32>
    %93 = vector.extract_strided_slice %0 {offsets = [1, 0], sizes = [1, 256], strides = [1, 1]} : vector<3x256xf32> to vector<1x256xf32>
    %c4_42 = arith.constant 4 : index
    %c1_43 = arith.constant 1 : index
    %94 = memref.load %arg1[%c4_42, %c1_43] : memref<6x3xf32, #tpu.memory_space<smem>>
    %95 = vector.broadcast %94 : f32 to vector<1x256xf32>
    %96 = arith.mulf %93, %95 : vector<1x256xf32>
    %97 = arith.addf %92, %96 : vector<1x256xf32>
    %98 = vector.extract_strided_slice %0 {offsets = [2, 0], sizes = [1, 256], strides = [1, 1]} : vector<3x256xf32> to vector<1x256xf32>
    %c4_44 = arith.constant 4 : index
    %c2_45 = arith.constant 2 : index
    %99 = memref.load %arg1[%c4_44, %c2_45] : memref<6x3xf32, #tpu.memory_space<smem>>
    %100 = vector.broadcast %99 : f32 to vector<1x256xf32>
    %101 = arith.mulf %98, %100 : vector<1x256xf32>
    %102 = arith.addf %97, %101 : vector<1x256xf32>
    %c4_46 = arith.constant 4 : index
    %103 = memref.load %arg2[%c4_46] : memref<6xf32, #tpu.memory_space<smem>>
    %104 = vector.broadcast %103 : f32 to vector<1x256xf32>
    %105 = arith.addf %102, %104 : vector<1x256xf32>
    %cst_47 = arith.constant 0.000000e+00 : f32
    %cst_48 = arith.constant 6.000000e+00 : f32
    %106 = vector.broadcast %cst_47 : f32 to vector<1x256xf32>
    %107 = arith.maximumf %106, %105 : vector<1x256xf32>
    %108 = vector.broadcast %cst_48 : f32 to vector<1x256xf32>
    %109 = arith.minimumf %108, %107 : vector<1x256xf32>
    %c4_49 = arith.constant 4 : index
    %c0_50 = arith.constant 0 : index
    %110 = vector.load %arg3[%c4_49, %c0_50] : memref<6x256xf32, #tpu.memory_space<vmem>>, vector<1x256xf32>
    tpu.vector_store %arg3[%c4_49, %c0_50], %109 {strides = array<i32>} : memref<6x256xf32, #tpu.memory_space<vmem>>, vector<1x256xf32>,
    %111 = vector.extract_strided_slice %0 {offsets = [0, 0], sizes = [1, 256], strides = [1, 1]} : vector<3x256xf32> to vector<1x256xf32>
    %c5 = arith.constant 5 : index
    %c0_51 = arith.constant 0 : index
    %112 = memref.load %arg1[%c5, %c0_51] : memref<6x3xf32, #tpu.memory_space<smem>>
    %113 = vector.broadcast %112 : f32 to vector<1x256xf32>
    %114 = arith.mulf %111, %113 : vector<1x256xf32>
    %115 = vector.extract_strided_slice %0 {offsets = [1, 0], sizes = [1, 256], strides = [1, 1]} : vector<3x256xf32> to vector<1x256xf32>
    %c5_52 = arith.constant 5 : index
    %c1_53 = arith.constant 1 : index
    %116 = memref.load %arg1[%c5_52, %c1_53] : memref<6x3xf32, #tpu.memory_space<smem>>
    %117 = vector.broadcast %116 : f32 to vector<1x256xf32>
    %118 = arith.mulf %115, %117 : vector<1x256xf32>
    %119 = arith.addf %114, %118 : vector<1x256xf32>
    %120 = vector.extract_strided_slice %0 {offsets = [2, 0], sizes = [1, 256], strides = [1, 1]} : vector<3x256xf32> to vector<1x256xf32>
    %c5_54 = arith.constant 5 : index
    %c2_55 = arith.constant 2 : index
    %121 = memref.load %arg1[%c5_54, %c2_55] : memref<6x3xf32, #tpu.memory_space<smem>>
    %122 = vector.broadcast %121 : f32 to vector<1x256xf32>
    %123 = arith.mulf %120, %122 : vector<1x256xf32>
    %124 = arith.addf %119, %123 : vector<1x256xf32>
    %c5_56 = arith.constant 5 : index
    %125 = memref.load %arg2[%c5_56] : memref<6xf32, #tpu.memory_space<smem>>
    %126 = vector.broadcast %125 : f32 to vector<1x256xf32>
    %127 = arith.addf %124, %126 : vector<1x256xf32>
    %cst_57 = arith.constant 0.000000e+00 : f32
    %cst_58 = arith.constant 6.000000e+00 : f32
    %128 = vector.broadcast %cst_57 : f32 to vector<1x256xf32>
    %129 = arith.maximumf %128, %127 : vector<1x256xf32>
    %130 = vector.broadcast %cst_58 : f32 to vector<1x256xf32>
    %131 = arith.minimumf %130, %129 : vector<1x256xf32>
    %c5_59 = arith.constant 5 : index
    %c0_60 = arith.constant 0 : index
    %132 = vector.load %arg3[%c5_59, %c0_60] : memref<6x256xf32, #tpu.memory_space<vmem>>, vector<1x256xf32>
    tpu.vector_store %arg3[%c5_59, %c0_60], %131 {strides = array<i32>} : memref<6x256xf32, #tpu.memory_space<vmem>>, vector<1x256xf32>,
    return
  }
}

</mosaic_0001>

<bundles_post_ra>
// kernel: tpu_custom_call.1
= control target key start
LH: loop header
LB: loop body
LE: loop exit
PB: predicated region body
PF: predicated region fallthrough
CT: control target
= control target key end

     0   :  { %8 = vsyncpa [#allocation4], 0  ;;  %s456_s0 = inlined_call_operand.vmem [shape: f32[3,256], index: 0, kind: input, shape index: {}]   ;;  %s457_s1 = inlined_call_operand.vmem [shape: f32[6,3], index: 1, kind: input, shape index: {}]   ;;  %s458_s2 = inlined_call_operand.vmem [shape: f32[6], index: 2, kind: input, shape index: {}]   ;;  %s459_s3 = inlined_call_operand.hbm [shape: f32[6,256], index: 3, kind: output, shape index: {}]  }
   0x1   :  { %9 = vsyncpa [#allocation6], 0 }
   0x2   :  { %10 = vsyncpa [#allocation3], 0  ;;  %s18_s14 = sshll.u32 %s457_s1, 4  ;;  %s27_s17 = sshll.u32 %s458_s2, 4  ;;  %s19_s14 = int_to_ptr.vmem [resolvable:$true] %s18_s14  ;;  %s28_s17 = int_to_ptr.vmem [resolvable:$true] %s27_s17 }
   0x3   :  { %s340_s18 = smov [#allocation2]   ;;  %s341_s19 = smov [#allocation5]  }
   0x4   :  { %21 = dma.vmem_to_smem %s19_s14, 128, %s340_s18, [#allocation4]  }
   0x5   :  { %30 = dma.vmem_to_smem %s28_s17, 16, %s341_s19, [#allocation6]  }
   0x6   :  { %334 = dma.done.wait [#allocation4], 128  }
   0x7   :  { %335 = vsyncadd [#allocation4], 4294967168 }
   0x8   :  { %336 = dma.done.wait [#allocation6], 16  }
   0x9   :  { %337 = vsyncadd [#allocation6], 4294967280 }
   0xa   :  { %39 = sfence }
   0xb   :  { %s41_s20 = sld [smem:[#allocation2]]  ;;  %v374_v0 = vld [vmem:[%s456_s0] sm:$0x77]  ;;  %v70_v27 = vlaneseq  ;;  %vm67_vm0 = vcmask 1040384   ;;  %s342_s16 = smov [#allocation7]  }
   0xc   :  { %s249_s21 = sld [smem:[#allocation2 + $0x1]]  ;;  %s236_s17 = sshll.u32 %s342_s16, 4  ;;  %s237_s17 = int_to_ptr.vmem [resolvable:$true] %s236_s17 }
   0xd   :  { %s251_s22 = sld [smem:[#allocation2 + $0x2]]  ;;  %vm407_vm1 = vcmp.lt.s32.totalorder %v70_v27, 256 }
   0xe   :  { %s369_s23 = sld [smem:[#allocation5]] }
   0xf   :  { %s253_s1 = sld [smem:[#allocation2 + $0x80]] }
  0x10   :  { %s254_s2 = sld [smem:[#allocation2 + $0x81]] }
  0x11   :  { %v42_v1 = vstv %s41_s20  ;;  %s256_s26 = sld [smem:[#allocation2 + $0x82]]  ;;  %s238_s20 = sshll.u32 %s459_s3, 4  ;;  %s239_s20 = int_to_ptr.hbm [resolvable:$true] %s238_s20 }
  0x12   :  { %v45_v2 = vstv %s249_s21  ;;  %s376_s27 = sld [smem:[#allocation5 + $0x1]]  ;;  %v43_v3 = vmul.f32 %v42_v1, %v374_v0 }
  0x13   :  { %v46_v4 = vmul.f32 %v45_v2, %v374_v0  ;;  %v53_v5 = vstv %s251_s22  ;;  %s259_s28 = sld [smem:[#allocation2 + $0x100]] }
  0x14   :  { %v54_v6 = vmul.f32 %v53_v5, %v374_v0  ;;  %s260_s29 = sld [smem:[#allocation2 + $0x101]]  ;;  %v61_v15 = vstv %s369_s23 }
  0x15   :  { %v250_v7 = vrot.slane %v46_v4, 9  ;;  %v77_v8 = vstv %s253_s1  ;;  %s262_s0 = sld [smem:[#allocation2 + $0x102]] }
  0x16   :  { %v252_v9 = vrot.slane %v54_v6, 10  ;;  %v80_v10 = vstv %s254_s2  ;;  %s381_s30 = sld [smem:[#allocation5 + $0x2]]  ;;  %v78_v12 = vmul.f32 %v77_v8, %v374_v0 }
  0x17   :  { %v51_v11 = vadd.f32 %v250_v7, %v43_v3  ;;  %v81_v13 = vmul.f32 %v80_v10, %v374_v0  ;;  %v88_v14 = vstv %s256_s26  ;;  %s265_s4 = sld [smem:[#allocation2 + $0x180]] }
  0x18   :  { %v89_v16 = vmul.f32 %v88_v14, %v374_v0  ;;  %s266_s5 = sld [smem:[#allocation2 + $0x181]]  ;;  %v96_v28 = vstv %s376_s27 }
  0x19   :  { %v59_v17 = vadd.f32 %v252_v9, %v51_v11  ;;  %v255_v18 = vrot.slane %v81_v13, 9  ;;  %v108_v19 = vstv %s259_s28  ;;  %s387_s6 = sld [smem:[#allocation2 + $0x182]] }
  0x1a   :  { %v257_v20 = vrot.slane %v89_v16, 10  ;;  %v109_v21 = vmul.f32 %v108_v19, %v374_v0  ;;  %v111_v22 = vstv %s260_s29  ;;  %s390_s7 = sld [smem:[#allocation5 + $0x3]] }
  0x1b   :  { %v62_v23 = vadd.f32 %v61_v15, %v59_v17  ;;  %v86_v24 = vadd.f32 %v255_v18, %v78_v12  ;;  %v112_v25 = vmul.f32 %v111_v22, %v374_v0  ;;  %v119_v26 = vstv %s262_s0  ;;  %s393_s8 = sld [smem:[#allocation2 + $0x200]] }
  0x1c   :  { %v120_v29 = vmul.f32 %v119_v26, %v374_v0  ;;  %s397_s9 = sld [smem:[#allocation2 + $0x201]]  ;;  %v127_v42 = vstv %s381_s30 }
  0x1d   :  { %v63_v30 = vmax.f32 %v62_v23, 0.0  ;;  %v94_v31 = vadd.f32 %v257_v20, %v86_v24  ;;  %v261_v32 = vrot.slane %v112_v25, 9  ;;  %v139_v33 = vstv %s265_s4  ;;  %s399_s10 = sld [smem:[#allocation2 + $0x202]] }
  0x1e   :  { %v263_v34 = vrot.slane %v120_v29, 10  ;;  %v140_v35 = vmul.f32 %v139_v33, %v374_v0  ;;  %v142_v36 = vstv %s266_s5  ;;  %s402_s11 = sld [smem:[#allocation5 + $0x4]] }
  0x1f   :  { %v64_v37 = vmin.f32 %v63_v30, 6.0  ;;  %v97_v38 = vadd.f32 %v96_v28, %v94_v31  ;;  %v117_v39 = vadd.f32 %v261_v32, %v109_v21  ;;  %v143_v40 = vmul.f32 %v142_v36, %v374_v0  ;;  %s405_s12 = sld [smem:[#allocation2 + $0x280]] }
  0x20   :  { %v150_v43 = vstv %s387_s6  ;;  %s413_s13 = sld [smem:[#allocation2 + $0x281]]  ;;  %v158_v61 = vstv %s390_s7 }
  0x21   :  { %v66_v44 = vrot.slane %v64_v37, 3  ;;  %v98_v45 = vmax.f32 %v97_v38, 0.0  ;;  %v125_v46 = vadd.f32 %v263_v34, %v117_v39  ;;  %v267_v47 = vrot.slane %v143_v40, 9  ;;  %s415_s14 = sld [smem:[#allocation2 + $0x282]] }
  0x22   :  { %v151_v48 = vmul.f32 %v150_v43, %v374_v0  ;;  %v170_v49 = vstv %s393_s8  ;;  %v173_v50 = vstv %s397_s9  ;;  %s428_s15 = sld [smem:[#allocation5 + $0x5]] }
  0x23   :  { %v68_v51 = vsel %vm67_vm0, %v64_v37, %v66_v44  ;;  %v99_v52 = vmin.f32 %v98_v45, 6.0  ;;  %v128_v53 = vadd.f32 %v127_v42, %v125_v46  ;;  %v148_v54 = vadd.f32 %v267_v47, %v140_v35 }
  0x24   :  { %74 = vst.msk [vmem:[#allocation7] ss:$8 sm:$0x3] %vm407_vm1, %v68_v51  ;;  %v269_v55 = vrot.slane %v151_v48, 10  ;;  %v171_v56 = vmul.f32 %v170_v49, %v374_v0  ;;  %v174_v57 = vmul.f32 %v173_v50, %v374_v0  ;;  %v181_v58 = vstv %s399_s10 }
  0x25   :  { %v101_v59 = vrot.slane %v99_v52, 3  ;;  %v129_v60 = vmax.f32 %v128_v53, 0.0  ;;  %v182_v62 = vmul.f32 %v181_v58, %v374_v0  ;;  %v201_v2 = vstv %s405_s12 }
  0x26   :  { %v156_v63 = vadd.f32 %v269_v55, %v148_v54  ;;  %v273_v1 = vrot.slane %v174_v57, 9  ;;  %v204_v3 = vstv %s413_s13  ;;  %v202_v7 = vmul.f32 %v201_v2, %v374_v0 }
  0x27   :  { %v102_v4 = vsel %vm67_vm0, %v99_v52, %v101_v59  ;;  %v130_v5 = vmin.f32 %v129_v60, 6.0  ;;  %v275_v6 = vrot.slane %v182_v62, 10  ;;  %v205_v10 = vmul.f32 %v204_v3, %v374_v0 }
  0x28   :  { %105 = vst.msk [vmem:[#allocation7 + $0x1] ss:$8 sm:$0x3] %vm407_vm1, %v102_v4  ;;  %v159_v8 = vadd.f32 %v158_v61, %v156_v63  ;;  %v179_v9 = vadd.f32 %v273_v1, %v171_v56  ;;  %v212_v11 = vstv %s415_s14  ;;  %v189_v13 = vstv %s402_s11 }
  0x29   :  { %v132_v12 = vrot.slane %v130_v5, 3  ;;  %v213_v14 = vmul.f32 %v212_v11, %v374_v0  ;;  %v279_v17 = vrot.slane %v205_v10, 9  ;;  %v220_v23 = vstv %s428_s15 }
  0x2a   :  { %v160_v15 = vmax.f32 %v159_v8, 0.0  ;;  %v187_v16 = vadd.f32 %v275_v6, %v179_v9 }
  0x2b   :  { %v133_v18 = vsel %vm67_vm0, %v130_v5, %v132_v12  ;;  %v281_v19 = vrot.slane %v213_v14, 10  ;;  %v210_v22 = vadd.f32 %v279_v17, %v202_v7 }
  0x2c   :  { %136 = vst.msk [vmem:[#allocation7 + $0x2] ss:$8 sm:$0x3] %vm407_vm1, %v133_v18  ;;  %v161_v20 = vmin.f32 %v160_v15, 6.0  ;;  %v190_v21 = vadd.f32 %v189_v13, %v187_v16 }
  0x2d   :  { %v218_v26 = vadd.f32 %v281_v19, %v210_v22 }
  0x2e   :  { %v163_v24 = vrot.slane %v161_v20, 3  ;;  %v191_v25 = vmax.f32 %v190_v21, 0.0 }
  0x2f   :  { %v221_v0 = vadd.f32 %v220_v23, %v218_v26 }
  0x30   :  { %v164_v27 = vsel %vm67_vm0, %v161_v20, %v163_v24  ;;  %v192_v28 = vmin.f32 %v191_v25, 6.0 }
  0x31   :  { %167 = vst.msk [vmem:[#allocation7 + $0x3] ss:$8 sm:$0x3] %vm407_vm1, %v164_v27  ;;  %v222_v30 = vmax.f32 %v221_v0, 0.0 }
  0x32   :  { %v194_v29 = vrot.slane %v192_v28, 3 }
  0x33   :  { %v223_v32 = vmin.f32 %v222_v30, 6.0 }
  0x34   :  { %v195_v31 = vsel %vm67_vm0, %v192_v28, %v194_v29 }
  0x35   :  { %198 = vst.msk [vmem:[#allocation7 + $0x4] ss:$8 sm:$0x3] %vm407_vm1, %v195_v31  ;;  %v225_v33 = vrot.slane %v223_v32, 3 }
  0x37   :  { %v226_v34 = vsel %vm67_vm0, %v223_v32, %v225_v33 }
  0x38   :  { %229 = vst.msk [vmem:[#allocation7 + $0x5] ss:$8 sm:$0x3] %vm407_vm1, %v226_v34 }
  0x39   :  { %241 = dma.vmem_to_hbm [thread:$0]  %s237_s17, 256, %s239_s20, [#allocation3]  }
  0x3a   :  { %338 = dma.done.wait [#allocation3], 256  }
  0x3b   :  { %339 = vsyncadd [#allocation3], 4294967040 }
  0x3c   :  { %246 = vsyncpa [#allocation3], 1 }
  0x3d   :  { %247 = vsyncpa [#allocation4], 1 }
  0x3e   :  { %248 = vsyncpa [#allocation6], 1 }

</bundles_post_ra>
